<compile_context>
chip_gen: v7x
topology: tpu7x:2x2x1
jax: 0.10.0
libtpu: 0.0.40
codegen_flags: <defaults>
</compile_context>

<pallas_src>
import functools

import jax
import jax.numpy as jnp
from jax.experimental import pallas as pl
from jax.experimental.pallas import tpu as pltpu


# --------------------------- hardware-aware tiling ---------------------------

def _vmem_capacity_bytes():
    # v5e/v6e: 128 MiB per TensorCore, v7x: 64 MiB.  Fall back conservatively.
    try:
        return int(pltpu.get_tpu_info().vmem_capacity_bytes)
    except Exception:
        return 64 * 1024 * 1024


_VMEM_CAP = _vmem_capacity_bytes()
# Scoped-VMEM limit handed to Mosaic (headroom below physical capacity).
_VMEM_LIMIT = int(_VMEM_CAP * 0.75)
# Budget for the lane-tiled, double-buffered working set of one pallas_call.
_TILE_BUDGET = int(_VMEM_CAP * 0.4)

_LANE_TILE_CANDIDATES = (2048, 1024, 512, 256, 128)


def _pick_lane_tile(total, rows, itemsize):
    """Largest lane tile (multiple of 128) dividing `total` whose double-buffered
    working set (`rows` sublane rows x tile lanes, in+out) fits the VMEM budget."""
    for t in _LANE_TILE_CANDIDATES:
        if total % t == 0 and 2 * rows * t * itemsize <= _TILE_BUDGET:
            return t
    return total  # small/odd sizes: single full-extent block (always legal)


# ----------------------------- Pallas kernels -------------------------------

def se_pool_kernel(x_ref, w1_ref, b1_ref, w2_ref, b2_ref, scale_ref, acc_ref, *, inv_hw):
    """Pass 1: accumulate per-(n,c) spatial sum; finalize fc1->SiLU->fc2->sigmoid."""
    k = pl.program_id(0)

    @pl.when(k == 0)
    def _():
        acc_ref[...] = jnp.zeros_like(acc_ref)

    # Partial spatial sum of this HW tile (fp32 accumulation; tile is not kept live).
    acc_ref[...] += jnp.sum(x_ref[...].astype(jnp.float32), axis=-1)

    @pl.when(k == pl.num_programs(0) - 1)
    def _():
        pooled = acc_ref[...] * inv_hw                               # true mean over H*W
        h = jnp.dot(pooled, w1_ref[...].astype(jnp.float32),
                    preferred_element_type=jnp.float32)
        h = h + b1_ref[...].astype(jnp.float32)
        h = h * jax.nn.sigmoid(h)                                    # SiLU
        s = jnp.dot(h, w2_ref[...].astype(jnp.float32),
                    preferred_element_type=jnp.float32)
        s = s + b2_ref[...].astype(jnp.float32)
        scale_ref[...] = jax.nn.sigmoid(s)                           # (N, C) fp32


def se_scale_kernel(scale_ref, x_ref, o_ref):
    """Pass 2a (identity path): o = scale * x, streamed over HW tiles."""
    s = scale_ref[...].astype(x_ref.dtype)                           # (N, C)
    o_ref[...] = (x_ref[...] * s[:, :, None]).astype(o_ref.dtype)


def se_pwconv_kernel(scale_ref, x_ref, w_ref, bn_s_ref, bn_b_ref, o_ref):
    """Pass 2b (conv path): fused SE-scale + 1x1 conv + folded BatchNorm.

    scale: (N, Cin)   x: (N, Cin, Tm)   w: (Cout, Cin)
    bn_s/bn_b: (Cout, 1)                o: (N, Cout, Tm)  (lane-dense spatial)
    """
    s = scale_ref[...].astype(jnp.float32)                           # (N, Cin)
    w = w_ref[...].astype(jnp.float32)                               # (Cout, Cin)
    # Fold the per-(n,c) SE scale into the conv weight (Cout*Cin work, not Cin*Tm).
    w_eff = w[None, :, :] * s[:, None, :]                            # (N, Cout, Cin)
    z = jnp.einsum("nok,nkm->nom", w_eff, x_ref[...].astype(jnp.float32),
                   preferred_element_type=jnp.float32)               # (N, Cout, Tm)
    z = z * bn_s_ref[...][None, :, :] + bn_b_ref[...][None, :, :]
    o_ref[...] = z.astype(o_ref.dtype)


# ------------------------------- Wrapper -------------------------------------

def squeeze_excitation_operation(x, params, in_chn, out_chn, stride):
    N, C, H, W = x.shape
    assert C == in_chn
    HW = H * W
    x3 = x.reshape(N, C, HW)

    w1, b1 = params["fc1_w"], params["fc1_b"]        # (C, S), (1, S)
    w2, b2 = params["fc2_w"], params["fc2_b"]        # (S, C), (1, C)
    itemsize = jnp.dtype(x.dtype).itemsize

    # ---------------- Pass 1: pooled sum -> SE scale (N, C) ----------------
    t_hw = _pick_lane_tile(HW, rows=N * C, itemsize=itemsize)
    scale = pl.pallas_call(
        functools.partial(se_pool_kernel, inv_hw=1.0 / float(HW)),
        out_shape=jax.ShapeDtypeStruct((N, C), jnp.float32),
        grid=(HW // t_hw,),
        in_specs=[
            pl.BlockSpec((N, C, t_hw), lambda k: (0, 0, k)),
            pl.BlockSpec(w1.shape, lambda k: (0, 0)),
            pl.BlockSpec(b1.shape, lambda k: (0, 0)),
            pl.BlockSpec(w2.shape, lambda k: (0, 0)),
            pl.BlockSpec(b2.shape, lambda k: (0, 0)),
        ],
        out_specs=pl.BlockSpec((N, C), lambda k: (0, 0)),
        scratch_shapes=[pltpu.VMEM((N, C), jnp.float32)],
        compiler_params=pltpu.CompilerParams(
            dimension_semantics=("arbitrary",),       # reduction axis (last)
            vmem_limit_bytes=_VMEM_LIMIT),
    )(x3, w1, b1, w2, b2)

    # ---------------- Pass 2a: identity path (pure SE scaling) ----------------
    if in_chn == out_chn and stride <= 1:
        t_s = _pick_lane_tile(HW, rows=2 * N * C, itemsize=itemsize)
        # NOTE: input_output_aliases={1: 0} could reuse x's HBM buffer on this path;
        # omitted so the caller's x stays valid for the host-side reference check.
        y = pl.pallas_call(
            se_scale_kernel,
            out_shape=jax.ShapeDtypeStruct((N, C, HW), x.dtype),
            grid=(HW // t_s,),
            in_specs=[
                pl.BlockSpec((N, C), lambda m: (0, 0)),
                pl.BlockSpec((N, C, t_s), lambda m: (0, 0, m)),
            ],
            out_specs=pl.BlockSpec((N, C, t_s), lambda m: (0, 0, m)),
            compiler_params=pltpu.CompilerParams(
                dimension_semantics=("parallel",),
                vmem_limit_bytes=_VMEM_LIMIT),
        )(scale, x3)
        return y.reshape(N, C, H, W)

    # ------------- Pass 2b: fused SE-scale + strided 1x1 conv + BN -------------
    if stride > 1:
        # TODO(synk): strided spatial subsample kept as XLA glue; could be folded into
        # the kernel with a strided / Element-indexed spatial BlockSpec.
        xs = x[:, :, ::stride, ::stride]
        Hs, Ws = xs.shape[2], xs.shape[3]
        xs = xs.reshape(N, C, Hs * Ws)
    else:
        Hs, Ws = H, W
        xs = x3
    Ms = Hs * Ws

    w = params["pw_w"]               # (Cout, Cin)
    bn_s = params["bn_scale"]        # (Cout, 1)
    bn_b = params["bn_bias"]         # (Cout, 1)
    Cout = w.shape[0]

    t_m = _pick_lane_tile(Ms, rows=N * (C + Cout), itemsize=itemsize)
    z = pl.pallas_call(
        se_pwconv_kernel,
        out_shape=jax.ShapeDtypeStruct((N, Cout, Ms), x.dtype),
        grid=(Ms // t_m,),
        in_specs=[
            pl.BlockSpec((N, C), lambda m: (0, 0)),
            pl.BlockSpec((N, C, t_m), lambda m: (0, 0, m)),
            pl.BlockSpec(w.shape, lambda m: (0, 0)),
            pl.BlockSpec(bn_s.shape, lambda m: (0, 0)),
            pl.BlockSpec(bn_b.shape, lambda m: (0, 0)),
        ],
        out_specs=pl.BlockSpec((N, Cout, t_m), lambda m: (0, 0, m)),
        compiler_params=pltpu.CompilerParams(
            dimension_semantics=("parallel",),
            vmem_limit_bytes=_VMEM_LIMIT),
    )(scale, xs, w, bn_s, bn_b)
    return z.reshape(N, Cout, Hs, Ws)


# ------------------------- Parameter construction ---------------------------

def make_params(key, in_chn, out_chn, stride, expand_ratio, dtype=jnp.float32):
    squeeze_chn = max(1, in_chn // 4 // expand_ratio)
    k1, k2, k3, k4, k5 = jax.random.split(key, 5)
    params = {
        # fc1: Conv2d(in_chn, squeeze_chn, 1) with bias; stored transposed (C, S)
        "fc1_w": jax.random.normal(k1, (in_chn, squeeze_chn), dtype) * 0.1,
        "fc1_b": jax.random.normal(k2, (1, squeeze_chn), dtype) * 0.1,
        # fc2: Conv2d(squeeze_chn, in_chn, 1) with bias; stored transposed (S, C)
        "fc2_w": jax.random.normal(k3, (squeeze_chn, in_chn), dtype) * 0.1,
        "fc2_b": jax.random.normal(k4, (1, in_chn), dtype) * 0.1,
    }
    if in_chn != out_chn or stride > 1:
        # PointwiseConv: Conv2d(in_chn, out_chn, 1, stride, bias=False) + BatchNorm2d (eval)
        params["pw_w"] = jax.random.normal(k5, (out_chn, in_chn), dtype) * 0.1  # (Cout, Cin)
        eps = 1e-5
        gamma = jnp.ones((out_chn,), dtype)
        beta = jnp.zeros((out_chn,), dtype)
        running_mean = jnp.zeros((out_chn,), dtype)
        running_var = jnp.ones((out_chn,), dtype)
        s = gamma / jnp.sqrt(running_var + eps)
        params["bn_scale"] = s.reshape(out_chn, 1)
        params["bn_bias"] = (beta - running_mean * s).reshape(out_chn, 1)
    return params


# ------------------------------ Reference -----------------------------------

def reference(x, params, in_chn, out_chn, stride):
    pooled = jnp.mean(x, axis=(2, 3))                                  # (N, C)
    h = pooled @ params["fc1_w"] + params["fc1_b"]
    h = h * jax.nn.sigmoid(h)
    s = jax.nn.sigmoid(h @ params["fc2_w"] + params["fc2_b"])          # (N, C)
    y = x * s[:, :, None, None]
    if in_chn == out_chn and stride <= 1:
        return y
    ys = y[:, :, ::stride, ::stride]
    z = jnp.einsum("oc,nchw->nohw", params["pw_w"], ys)
    z = z * params["bn_scale"].reshape(1, -1, 1, 1) + params["bn_bias"].reshape(1, -1, 1, 1)
    return z


# -------------------------------- Main ---------------------------------------

if __name__ == "__main__":
    key = jax.random.PRNGKey(0)
    kx, kp1, kp2 = jax.random.split(key, 3)

    N, C, H, W = 2, 8, 16, 16
    x = jax.random.normal(kx, (N, C, H, W), jnp.float32)

    # Config A: identity path (in == out, stride == 1) -> pure SE scaling.
    params_a = make_params(kp1, C, C, 1, expand_ratio=1)
    out_a = jax.block_until_ready(squeeze_excitation_operation(x, params_a, C, C, 1))
    ref_a = reference(x, params_a, C, C, 1)
    assert out_a.shape == ref_a.shape, (out_a.shape, ref_a.shape)
    assert jnp.allclose(out_a, ref_a, atol=1e-4, rtol=1e-4), \
        float(jnp.max(jnp.abs(out_a - ref_a)))

    # Config B: downsample path (in != out, stride 2) -> fused SE + 1x1 conv + BN.
    out_chn, stride = 16, 2
    params_b = make_params(kp2, C, out_chn, stride, expand_ratio=1)
    out_b = jax.block_until_ready(
        squeeze_excitation_operation(x, params_b, C, out_chn, stride))
    ref_b = reference(x, params_b, C, out_chn, stride)
    assert out_b.shape == ref_b.shape, (out_b.shape, ref_b.shape)
    assert jnp.allclose(out_b, ref_b, atol=1e-4, rtol=1e-4), \
        float(jnp.max(jnp.abs(out_b - ref_b)))

    print("KERNEL_OK")
</pallas_src>

<mosaic_0001>
module attributes {stable_mosaic.version = 11 : i64} {
  func.func @se_pool_kernel(%arg0: i32, %arg1: memref<2x8x256xf32, #tpu.memory_space<vmem>>, %arg2: memref<8x2xf32, #tpu.memory_space<vmem>>, %arg3: memref<1x2xf32, #tpu.memory_space<vmem>>, %arg4: memref<2x8xf32, #tpu.memory_space<vmem>>, %arg5: memref<1x8xf32, #tpu.memory_space<vmem>>, %arg6: memref<2x8xf32, #tpu.memory_space<vmem>>, %arg7: memref<2x8xf32, #tpu.memory_space<vmem>>) attributes {dimension_semantics = [#tpu.dimension_semantics<arbitrary>], iteration_bounds = array<i64: 1>, scalar_prefetch = 0 : i64, scratch_operands = 1 : i64, tpu.core_type = #tpu.core_type<tc>, window_params = [{transform_indices = @transform_0, window_bounds = array<i64: 2, 8, 256>}, {pipeline_mode = #tpu.pipeline_mode<synchronous>, transform_indices = @transform_1, window_bounds = array<i64: 8, 2>}, {pipeline_mode = #tpu.pipeline_mode<synchronous>, transform_indices = @transform_2, window_bounds = array<i64: 1, 2>}, {pipeline_mode = #tpu.pipeline_mode<synchronous>, transform_indices = @transform_3, window_bounds = array<i64: 2, 8>}, {pipeline_mode = #tpu.pipeline_mode<synchronous>, transform_indices = @transform_4, window_bounds = array<i64: 1, 8>}, {pipeline_mode = #tpu.pipeline_mode<synchronous>, transform_indices = @transform_5, window_bounds = array<i64: 2, 8>}]} {
    %c0_i32 = arith.constant 0 : i32
    %0 = arith.cmpi eq, %arg0, %c0_i32 : i32
    %1 = arith.extui %0 : i1 to i32
    %c0_i32_0 = arith.constant 0 : i32
    %2 = arith.cmpi ne, %1, %c0_i32_0 : i32
    scf.if %2 {
      %cst_9 = arith.constant 0.000000e+00 : f32
      %11 = vector.broadcast %cst_9 : f32 to vector<2x8xf32>
      %c0_10 = arith.constant 0 : index
      %c0_11 = arith.constant 0 : index
      %12 = vector.load %arg7[%c0_10, %c0_11] : memref<2x8xf32, #tpu.memory_space<vmem>>, vector<2x8xf32>
      tpu.vector_store %arg7[%c0_10, %c0_11], %11 {strides = array<i32>} : memref<2x8xf32, #tpu.memory_space<vmem>>, vector<2x8xf32>,
    } else {
    }
    %c0 = arith.constant 0 : index
    %c0_1 = arith.constant 0 : index
    %3 = vector.load %arg7[%c0, %c0_1] : memref<2x8xf32, #tpu.memory_space<vmem>>, vector<2x8xf32>
    %c0_2 = arith.constant 0 : index
    %c0_3 = arith.constant 0 : index
    %c0_4 = arith.constant 0 : index
    %4 = vector.load %arg1[%c0_2, %c0_3, %c0_4] : memref<2x8x256xf32, #tpu.memory_space<vmem>>, vector<2x8x256xf32>
    %cst = arith.constant dense<0.000000e+00> : vector<2x8xf32>
    %5 = vector.multi_reduction <add>, %4, %cst [2] : vector<2x8x256xf32> to vector<2x8xf32>
    %6 = arith.addf %3, %5 : vector<2x8xf32>
    %c0_5 = arith.constant 0 : index
    %c0_6 = arith.constant 0 : index
    %7 = vector.load %arg7[%c0_5, %c0_6] : memref<2x8xf32, #tpu.memory_space<vmem>>, vector<2x8xf32>
    tpu.vector_store %arg7[%c0_5, %c0_6], %6 {strides = array<i32>} : memref<2x8xf32, #tpu.memory_space<vmem>>, vector<2x8xf32>,
    %c0_i32_7 = arith.constant 0 : i32
    %8 = arith.cmpi eq, %arg0, %c0_i32_7 : i32
    %9 = arith.extui %8 : i1 to i32
    %c0_i32_8 = arith.constant 0 : i32
    %10 = arith.cmpi ne, %9, %c0_i32_8 : i32
    scf.if %10 {
      %c0_9 = arith.constant 0 : index
      %c0_10 = arith.constant 0 : index
      %11 = vector.load %arg7[%c0_9, %c0_10] : memref<2x8xf32, #tpu.memory_space<vmem>>, vector<2x8xf32>
      %cst_11 = arith.constant 3.906250e-03 : f32
      %12 = vector.broadcast %cst_11 : f32 to vector<2x8xf32>
      %13 = arith.mulf %11, %12 : vector<2x8xf32>
      %c0_12 = arith.constant 0 : index
      %c0_13 = arith.constant 0 : index
      %14 = vector.load %arg2[%c0_12, %c0_13] : memref<8x2xf32, #tpu.memory_space<vmem>>, vector<8x2xf32>
      %cst_14 = arith.constant dense<0.000000e+00> : vector<2x2xf32>
      %15 = tpu.matmul %13, %14, %cst_14 {dimension_numbers = #tpu.dot_dimension_numbers<[1], [0], [0], [1], [0, 0, 1, 1], [], []>} : vector<2x8xf32>, vector<8x2xf32>, vector<2x2xf32> -> vector<2x2xf32>
      %c0_15 = arith.constant 0 : index
      %c0_16 = arith.constant 0 : index
      %16 = vector.load %arg3[%c0_15, %c0_16] : memref<1x2xf32, #tpu.memory_space<vmem>>, vector<1x2xf32>
      %17 = vector.broadcast %16 : vector<1x2xf32> to vector<2x2xf32>
      %18 = arith.addf %15, %17 : vector<2x2xf32>
      %19 = arith.negf %18 : vector<2x2xf32>
      %20 = math.exp %19 : vector<2x2xf32>
      %cst_17 = arith.constant 1.000000e+00 : f32
      %21 = vector.broadcast %cst_17 : f32 to vector<2x2xf32>
      %22 = arith.addf %21, %20 : vector<2x2xf32>
      %23 = arith.divf %21, %22 : vector<2x2xf32>
      %24 = arith.mulf %18, %23 : vector<2x2xf32>
      %c0_18 = arith.constant 0 : index
      %c0_19 = arith.constant 0 : index
      %25 = vector.load %arg4[%c0_18, %c0_19] : memref<2x8xf32, #tpu.memory_space<vmem>>, vector<2x8xf32>
      %cst_20 = arith.constant dense<0.000000e+00> : vector<2x8xf32>
      %26 = tpu.matmul %24, %25, %cst_20 {dimension_numbers = #tpu.dot_dimension_numbers<[1], [0], [0], [1], [0, 0, 1, 1], [], []>} : vector<2x2xf32>, vector<2x8xf32>, vector<2x8xf32> -> vector<2x8xf32>
      %c0_21 = arith.constant 0 : index
      %c0_22 = arith.constant 0 : index
      %27 = vector.load %arg5[%c0_21, %c0_22] : memref<1x8xf32, #tpu.memory_space<vmem>>, vector<1x8xf32>
      %28 = vector.broadcast %27 : vector<1x8xf32> to vector<2x8xf32>
      %29 = arith.addf %26, %28 : vector<2x8xf32>
      %30 = arith.negf %29 : vector<2x8xf32>
      %31 = math.exp %30 : vector<2x8xf32>
      %cst_23 = arith.constant 1.000000e+00 : f32
      %32 = vector.broadcast %cst_23 : f32 to vector<2x8xf32>
      %33 = arith.addf %32, %31 : vector<2x8xf32>
      %34 = arith.divf %32, %33 : vector<2x8xf32>
      %c0_24 = arith.constant 0 : index
      %c0_25 = arith.constant 0 : index
      %35 = vector.load %arg6[%c0_24, %c0_25] : memref<2x8xf32, #tpu.memory_space<vmem>>, vector<2x8xf32>
      tpu.vector_store %arg6[%c0_24, %c0_25], %34 {strides = array<i32>} : memref<2x8xf32, #tpu.memory_space<vmem>>, vector<2x8xf32>,
    } else {
    }
    return
  }
  func.func @transform_0(%arg0: i32) -> (i32, i32, i32) {
    %c0_i32 = arith.constant 0 : i32
    %c0_i32_0 = arith.constant 0 : i32
    %c0_i32_1 = arith.constant 0 : i32
    return %c0_i32, %c0_i32_0, %arg0 : i32, i32, i32
  }
  func.func @transform_1(%arg0: i32) -> (i32, i32) {
    %c0_i32 = arith.constant 0 : i32
    %c0_i32_0 = arith.constant 0 : i32
    %c0_i32_1 = arith.constant 0 : i32
    return %c0_i32, %c0_i32_0 : i32, i32
  }
  func.func @transform_2(%arg0: i32) -> (i32, i32) {
    %c0_i32 = arith.constant 0 : i32
    %c0_i32_0 = arith.constant 0 : i32
    %c0_i32_1 = arith.constant 0 : i32
    return %c0_i32, %c0_i32_0 : i32, i32
  }
  func.func @transform_3(%arg0: i32) -> (i32, i32) {
    %c0_i32 = arith.constant 0 : i32
    %c0_i32_0 = arith.constant 0 : i32
    %c0_i32_1 = arith.constant 0 : i32
    return %c0_i32, %c0_i32_0 : i32, i32
  }
  func.func @transform_4(%arg0: i32) -> (i32, i32) {
    %c0_i32 = arith.constant 0 : i32
    %c0_i32_0 = arith.constant 0 : i32
    %c0_i32_1 = arith.constant 0 : i32
    return %c0_i32, %c0_i32_0 : i32, i32
  }
  func.func @transform_5(%arg0: i32) -> (i32, i32) {
    %c0_i32 = arith.constant 0 : i32
    %c0_i32_0 = arith.constant 0 : i32
    %c0_i32_1 = arith.constant 0 : i32
    return %c0_i32, %c0_i32_0 : i32, i32
  }
}

</mosaic_0001>

<bundles_post_ra>
// kernel: tpu_custom_call.1
= control target key start
LH: loop header
LB: loop body
LE: loop exit
PB: predicated region body
PF: predicated region fallthrough
CT: control target
= control target key end

     0   :  { %10 = vsyncpa [#allocation4], 0  ;;  %s430_s0 = inlined_call_operand.hbm [shape: f32[2,8,256], index: 0, kind: input, shape index: {}]   ;;  %s431_s1 = inlined_call_operand.vmem [shape: f32[8,2], index: 1, kind: input, shape index: {}]   ;;  %s432_s2 = inlined_call_operand.vmem [shape: f32[1,2], index: 2, kind: input, shape index: {}]   ;;  %s433_s3 = inlined_call_operand.vmem [shape: f32[2,8], index: 3, kind: input, shape index: {}]   ;;  %s434_s4 = inlined_call_operand.vmem [shape: f32[1,8], index: 4, kind: input, shape index: {}]   ;;  %s435_s5 = inlined_call_operand.hbm [shape: f32[2,8], index: 5, kind: output, shape index: {}]  }
   0x1   :  { %11 = vsyncpa [#allocation5], 0  ;;  %s355_s18 = smov [#allocation3]   ;;  %s307_s22 = scalar_lea.hbm %s430_s0, 512 }
   0x2   :  { %s17_s19 = sshll.u32 %s355_s18, 4  ;;  %p308_p0 = scmp.ne.s32.totalorder %s430_s0, %s307_s22  ;;  %s18_s19 = int_to_ptr.vmem [resolvable:$true] %s17_s19 }
   0x3   :  { %p311_p1 = scmp.lt.u32.totalorder %s307_s22, %s430_s0 }
   0x5   :  { %p313_p2 = pnand %p311_p1, %p308_p0 }
   0x7   :  { %316 = shalt.err (!%p313_p2)
}
   0x8   :  { %s317_s27 = scalar_lea.vmem %s18_s19, 512  ;;  %p322_p4 = scmp.lt.s32.totalorder %s18_s19, %s18_s19 }
   0x9   :  { %p318_p3 = scmp.ne.s32.totalorder %s18_s19, %s317_s27  ;;  %p323_p5 = scmp.lt.s32.totalorder %s317_s27, %s317_s27 }
   0xb   :  { %p324_p6 = por %p323_p5, %p322_p4 }
   0xd   :  { %p325_p7 = pnand %p324_p6, %p318_p3 }
   0xf   :  { %328 = shalt.err (!%p325_p7)
}
  0x10   :  { %s356_s28 = smov 256   ;;  %s357_s29 = smov 16  }
  0x11   :  { %23 = dma.hbm_to_vmem [thread:$0]  %s430_s0, 512, %s18_s19, [#allocation4], %s356_s28, %s356_s28, %s357_s29  }
  0x12   :  { %351 = dma.done.wait [#allocation4], 512  }
  0x13   :  { %352 = vsyncadd [#allocation4], 4294966784  ;;  %v42_v0 = vld [vmem:[#allocation3] sm:$0xff]  ;;  %v43_v1 = vld [vmem:[#allocation3 + $0x8] sm:$0xff]  ;;  %vm39_vm0 = vcmask 58368   ;;  %v358_v6 = vmov 0.0   ;;  %v54_v8 = vlaneseq }
  0x14   :  { %v44_v2 = vld [vmem:[#allocation3 + $0x10] sm:$0xff]  ;;  %v46_v3 = vadd.f32 %v43_v1, %v42_v0  ;;  %v45_v4 = vld [vmem:[#allocation3 + $0x18] sm:$0xff]  ;;  %40 = vst.msk [vmem:[#allocation2] sm:$0x3] %vm39_vm0, %v358_v6  ;;  %283 = vmatprep.subr.mxu0 %v358_v6  ;;  %288 = vmatprep.subr.mxu1 %v358_v6  ;;  %vm359_vm1 = vmmov 0   ;;  %vm64_vm2 = vcmask 1041409  }
  0x15   :  { %v49_v5 = vadd.f32 %v45_v4, %v44_v2  ;;  %v75_v7 = vld [vmem:[%s431_s1] sm:$0xff]  ;;  %285 = vmatprep.mubr.msk.f32.mxu0 %vm359_vm1, %v358_v6  ;;  %290 = vmatprep.mubr.msk.f32.mxu1 %vm359_vm1, %v358_v6  ;;  %v55_v9 = vand.u32 127, %v54_v8  ;;  %v57_v10 = vshrl.u32 %v54_v8, 7  ;;  %vm83_vm3 = vcmask 64512  }
  0x16   :  { %47 = vadd.xlane.f32.xlu0 %v46_v3  ;;  %284 = vmatpush3.msra.mxu0 %v75_v7  ;;  %v164_v21 = vld [vmem:[%s433_s3] sm:$0x3]  ;;  %vm176_vm4 = vcmask 1041408   ;;  %vm172_vm5 = vcmask 15360  }
  0x17   :  { %v58_v12 = vsub.s32 %v55_v9, %v57_v10  ;;  %289 = vmatpush3.msk.msra.mxu1 %vm176_vm4, %v164_v21  ;;  %v272_v22 = vld [vmem:[%s432_s2] ss:$0 sm:$0xff]  ;;  %s360_s2 = smov [#allocation6]  }
  0x18   :  { %v275_v31 = vld [vmem:[%s434_s4] ss:$0 sm:$0xff]  ;;  %s263_s12 = sshll.u32 %s360_s2, 4  ;;  %s264_s12 = int_to_ptr.vmem [resolvable:$true] %s263_s12 }
  0x19   :  { %s329_s13 = scalar_lea.vmem %s264_s12, 32  ;;  %p334_p9 = scmp.lt.s32.totalorder %s264_s12, %s264_s12 }
  0x1a   :  { %50 = vadd.xlane.f32.xlu0 %v49_v5  ;;  %p330_p8 = scmp.ne.s32.totalorder %s264_s12, %s329_s13  ;;  %p335_p10 = scmp.lt.s32.totalorder %s329_s13, %s329_s13 }
  0x1b   :  { %v41_v16 = vld [vmem:[#allocation2] sm:$0x3] }
  0x1c   :  { %p336_p11 = por %p335_p10, %p334_p9 }
  0x1e   :  { %p337_p12 = pnand %p336_p11, %p330_p8 }
  0xa3   :  { %v48_v11 = vpop.xlane.xlu0 %47 }
  0xa4   :  { %v59_v14 = vrot.slane %v48_v11, %v58_v12 }
  0xa7   :  { %v51_v13 = vpop.xlane.xlu0 %50 }
  0xa8   :  { %v63_v15 = vrot.slane %v51_v13, %v58_v12 }
  0xaa   :  { %v65_v17 = vsel %vm64_vm2, %v63_v15, %v59_v14 }
  0xab   :  { %v67_v18 = vadd.f32 %v65_v17, %v41_v16 }
  0xad   :  { %69 = vst.msk [vmem:[#allocation2] sm:$0x3] %vm39_vm0, %v67_v18 }
  0xb4   :  { %v73_v19 = vld [vmem:[#allocation2] sm:$0x3] }
  0xb5   :  { %v74_v20 = vmul.f32 0.00390625, %v73_v19 }
  0xb7   :  { %286 = vmatmul.mubr.msk.f32.vlgmr.msra.gmra.mrb[0].mxu0 %vm83_vm3, %v74_v20 }
 0x18a   :  { %v153_v23 = vpop.f32.mrb[0].mxu0 }
 0x18b   :  { %v154_v24 = vadd.f32 %v272_v22, %v153_v23  ;;  %v287_v25 = vpop.f32.mrb[1].mxu0 }
 0x18d   :  { %v274_v26 = vmul.f32 -1.442695, %v154_v24 }
 0x18f   :  { %299 = vpow2.f32 %v274_v26 }
 0x199   :  { %v300_v27 = vpop.eup %299 }
 0x19a   :  { %v160_v28 = vadd.f32 1.0, %v300_v27 }
 0x19c   :  { %301 = vrcp.f32 %v160_v28 }
 0x1a6   :  { %v302_v29 = vpop.eup %301 }
 0x1a7   :  { %v163_v30 = vmul.f32 %v302_v29, %v154_v24 }
 0x1a9   :  { %291 = vmatmul.mubr.msk.f32.vlgmr.msra.gmra.mrb[0].mxu1 %vm172_vm5, %v163_v30 }
 0x27c   :  { %v246_v32 = vpop.f32.mrb[0].mxu1 }
 0x27d   :  { %v247_v33 = vadd.f32 %v275_v31, %v246_v32  ;;  %v292_v34 = vpop.f32.mrb[1].mxu1 }
 0x27f   :  { %v278_v35 = vmul.f32 -1.442695, %v247_v33 }
 0x281   :  { %303 = vpow2.f32 %v278_v35 }
 0x28b   :  { %v304_v36 = vpop.eup %303 }
 0x28c   :  { %v253_v37 = vadd.f32 1.0, %v304_v36 }
 0x28e   :  { %305 = vrcp.f32 %v253_v37 }
 0x298   :  { %v306_v38 = vpop.eup %305 }
 0x299   :  { %256 = vst.msk [vmem:[#allocation6] sm:$0x3] %vm39_vm0, %v306_v38 }
 0x29a   :  { %340 = shalt.err (!%p337_p12)
}
 0x29b   :  { %s341_s15 = scalar_lea.hbm %s435_s5, 32 }
 0x29c   :  { %p342_p13 = scmp.ne.s32.totalorder %s435_s5, %s341_s15  ;;  %p345_p0 = scmp.lt.u32.totalorder %s341_s15, %s435_s5 }
 0x29e   :  { %p347_p1 = pnand %p345_p0, %p342_p13 }
 0x2a0   :  { %350 = shalt.err (!%p347_p1)
}
 0x2a1   :  { %266 = dma.vmem_to_hbm [thread:$0]  %s264_s12, 32, %s435_s5, [#allocation5]  }
 0x2a2   :  { %353 = dma.done.wait [#allocation5], 32  }
 0x2a3   :  { %354 = vsyncadd [#allocation5], 4294967264 }
 0x2a4   :  { %270 = vsyncpa [#allocation4], 1 }
 0x2a5   :  { %271 = vsyncpa [#allocation5], 1 }

</bundles_post_ra>
